<compile_context>
chip_gen: v6e
topology: v6e:2x2x1
jax: 0.10.0
libtpu: 0.0.40
codegen_flags: <defaults>
</compile_context>

<pallas_src>
import jax
import jax.numpy as jnp
import numpy as np
from jax import lax
from jax.experimental import pallas as pl
from jax.experimental.pallas import tpu as pltpu

_MIB = 1024 * 1024


def _vmem_limit_bytes(*block_bytes):
    """Scoped-VMEM budget: sum of blocks x double-buffer x headroom, clamped
    so it is valid on every generation (v7x has only 64 MiB physical VMEM)."""
    need = 4 * int(sum(block_bytes))
    return int(min(max(need, 32 * _MIB), 48 * _MIB))


# ----------------------------------------------------------------------------
# Single-buffering (pl.Buffered(1)) for constant-index weight blocks halves
# their VMEM footprint (2 x 6.25 MiB -> 6.25 MiB per weight at C=1280).
# Probe once and fall back to default double-buffering if this JAX build does
# not support pipeline_mode on pallas_call BlockSpecs.
# ----------------------------------------------------------------------------
_BUFFERED1_OK = None


def _buffered1_supported():
    global _BUFFERED1_OK
    if _BUFFERED1_OK is None:
        try:
            def _probe(x_ref, o_ref):
                o_ref[...] = x_ref[...]

            out = pl.pallas_call(
                _probe,
                out_shape=jax.ShapeDtypeStruct((8, 128), jnp.float32),
                grid=(1,),
                in_specs=[pl.BlockSpec((8, 128), lambda i: (0, 0),
                                       pipeline_mode=pl.Buffered(1))],
                out_specs=pl.BlockSpec((8, 128), lambda i: (0, 0)),
            )(jnp.zeros((8, 128), jnp.float32))
            jax.block_until_ready(out)
            _BUFFERED1_OK = True
        except Exception:
            _BUFFERED1_OK = False
    return _BUFFERED1_OK


def _weight_spec(shape, index_map):
    """BlockSpec for a weight whose index_map is constant across the grid."""
    if _buffered1_supported():
        return pl.BlockSpec(shape, index_map, pipeline_mode=pl.Buffered(1))
    return pl.BlockSpec(shape, index_map)


# ----------------------------------------------------------------------------
# Kernel 1: per-frame QK attention scores -> (N, HW, HW), scaled by 1/sqrt(C)
#   x is bf16, weights are pre-transposed bf16, accumulation in f32.
# ----------------------------------------------------------------------------
def spatial_scores(xb, wk_t, wq_t):
    N, HW, C = xb.shape
    scale = 1.0 / (float(C) ** 0.5)

    def kernel(x_ref, wk_ref, wq_ref, s_ref):
        x = x_ref[0]                                                  # (HW, C) bf16
        k = jnp.dot(x, wk_ref[...], preferred_element_type=jnp.float32)
        q = jnp.dot(x, wq_ref[...], preferred_element_type=jnp.float32)
        # K @ Q^T without an explicit transpose: contract both on channel axis.
        s = lax.dot_general(k.astype(jnp.bfloat16), q.astype(jnp.bfloat16),
                            (((1,), (1,)), ((), ())),
                            preferred_element_type=jnp.float32)
        s_ref[0] = s * scale

    vmem_limit = _vmem_limit_bytes(HW * C * 2, C * C * 2, C * C * 2, HW * HW * 4)
    return pl.pallas_call(
        kernel,
        out_shape=jax.ShapeDtypeStruct((N, HW, HW), jnp.float32),
        grid=(N,),
        in_specs=[
            pl.BlockSpec((1, HW, C), lambda n: (n, 0, 0)),
            _weight_spec((C, C), lambda n: (0, 0)),
            _weight_spec((C, C), lambda n: (0, 0)),
        ],
        out_specs=pl.BlockSpec((1, HW, HW), lambda n: (n, 0, 0)),
        compiler_params=pltpu.CompilerParams(
            dimension_semantics=("parallel",),
            vmem_limit_bytes=vmem_limit),
    )(xb, wk_t, wq_t)


# ----------------------------------------------------------------------------
# Kernel 2: Softmax2d == softmax over dim -3 (the frame axis) of (N, HW, HW),
#           tiled over score rows so it pipelines and fits every VMEM budget.
# ----------------------------------------------------------------------------
def softmax_over_frames(scores, row_tile=128):
    N, HW, _ = scores.shape
    tile = row_tile if HW % row_tile == 0 else HW

    def kernel(s_ref, o_ref):
        s = s_ref[...]                                                # (N, tile, HW)
        m = jnp.max(s, axis=0, keepdims=True)
        e = jnp.exp(s - m)
        o_ref[...] = e / jnp.sum(e, axis=0, keepdims=True)

    blk = N * tile * HW * 4
    return pl.pallas_call(
        kernel,
        out_shape=jax.ShapeDtypeStruct(scores.shape, jnp.float32),
        grid=(HW // tile,),
        in_specs=[pl.BlockSpec((N, tile, HW), lambda p: (0, p, 0))],
        out_specs=pl.BlockSpec((N, tile, HW), lambda p: (0, p, 0)),
        compiler_params=pltpu.CompilerParams(
            dimension_semantics=("parallel",),
            vmem_limit_bytes=_vmem_limit_bytes(blk, blk)),
    )(scores)


# ----------------------------------------------------------------------------
# Kernel 3: per-frame attend -> refine -> alpha*skip -> spatial avg-pool
#           -> fused classifier (lane-dense, F padded to 128) per frame.
# ----------------------------------------------------------------------------
def attend_refine_pool_classify(sm, xb, wv_t, wr_t, wc_t, bc_pad, alpha):
    N, HW, C = xb.shape
    F_pad = wc_t.shape[1]

    def kernel(s_ref, x_ref, wv_ref, wr_ref, wc_ref, bc_ref, alpha_ref, o_ref):
        x = x_ref[0]                                                  # (HW, C) bf16
        v = jnp.dot(x, wv_ref[...], preferred_element_type=jnp.float32)
        att = jnp.dot(s_ref[0].astype(jnp.bfloat16), v.astype(jnp.bfloat16),
                      preferred_element_type=jnp.float32)             # (HW, C)
        refined = jnp.dot(att.astype(jnp.bfloat16), wr_ref[...],
                          preferred_element_type=jnp.float32)
        out = alpha_ref[0] * refined + x.astype(jnp.float32)          # skip (f32)
        pooled = jnp.mean(out, axis=0, keepdims=True)                 # (1, C) f32
        logits = jnp.dot(pooled.astype(jnp.bfloat16), wc_ref[...],
                         preferred_element_type=jnp.float32) + bc_ref[...]
        o_ref[0] = logits                                             # (1, F_pad)

    vmem_limit = _vmem_limit_bytes(HW * HW * 4, HW * C * 2, C * C * 2,
                                   C * C * 2, C * F_pad * 2, F_pad * 4, F_pad * 4)
    return pl.pallas_call(
        kernel,
        out_shape=jax.ShapeDtypeStruct((N, 1, F_pad), jnp.float32),
        grid=(N,),
        in_specs=[
            pl.BlockSpec((1, HW, HW), lambda n: (n, 0, 0)),
            pl.BlockSpec((1, HW, C), lambda n: (n, 0, 0)),
            _weight_spec((C, C), lambda n: (0, 0)),
            _weight_spec((C, C), lambda n: (0, 0)),
            _weight_spec((C, F_pad), lambda n: (0, 0)),
            _weight_spec((1, F_pad), lambda n: (0, 0)),
            pl.BlockSpec(memory_space=pltpu.MemorySpace.SMEM),
        ],
        out_specs=pl.BlockSpec((1, 1, F_pad), lambda n: (n, 0, 0)),
        compiler_params=pltpu.CompilerParams(
            dimension_semantics=("parallel",),
            vmem_limit_bytes=vmem_limit),
    )(sm, xb, wv_t, wr_t, wc_t, bc_pad, alpha)


# ----------------------------------------------------------------------------
# Kernel 4: masked mean over the valid frames of each video
#           (scalar-prefetched sequence lengths, lane-dense 128-wide logits).
# ----------------------------------------------------------------------------
def masked_mean_over_frames(padded_logits, seq_lens_arr):
    B, n_frames, F_pad = padded_logits.shape

    def kernel(len_ref, l_ref, o_ref):
        b = pl.program_id(0)
        logits = l_ref[0]                                             # (n_frames, F_pad)
        L = len_ref[b]
        rows = lax.broadcasted_iota(jnp.int32, logits.shape, 0)
        masked = jnp.where(rows < L, logits, 0.0)
        denom = jnp.maximum(L, 1).astype(jnp.float32)                 # guard L == 0
        o_ref[0] = jnp.sum(masked, axis=0, keepdims=True) / denom

    out = pl.pallas_call(
        kernel,
        out_shape=jax.ShapeDtypeStruct((B, 1, F_pad), jnp.float32),
        grid_spec=pltpu.PrefetchScalarGridSpec(
            num_scalar_prefetch=1,
            grid=(B,),
            in_specs=[pl.BlockSpec((1, n_frames, F_pad), lambda b, lens: (b, 0, 0))],
            out_specs=pl.BlockSpec((1, 1, F_pad), lambda b, lens: (b, 0, 0)),
        ),
        compiler_params=pltpu.CompilerParams(dimension_semantics=("parallel",)),
    )(seq_lens_arr, padded_logits)
    return out[:, 0, :]                                               # (B, F_pad)


# ----------------------------------------------------------------------------
# Glue: split per-frame logits per video and zero-pad to n_frames
# (torch.split + features_padding). Applied to 128-wide logits, not to the
# 1280-wide pooled features, so the padded copy is ~10x smaller than before.
# ----------------------------------------------------------------------------
def pad_per_video(per_frame, seq_lens, n_frames):
    rows, off = [], 0
    for L in seq_lens:
        chunk = per_frame[off:off + L]
        rows.append(jnp.pad(chunk, ((0, n_frames - L), (0, 0))))
        off += L
    return jnp.stack(rows)                                            # (B, nf, F_pad)


# ----------------------------------------------------------------------------
# Full forward (post-backbone part of EffnetV2_Key_Frame.forward)
# ----------------------------------------------------------------------------
def effnet_key_frame_forward(feats_nchw, seq_lens, params, n_frames):
    N, C, H, W = feats_nchw.shape
    HW = H * W
    # NCHW -> N, HW, C ; bf16 activations for the MXU (f32 accumulation inside).
    xf = jnp.transpose(feats_nchw.reshape(N, C, HW), (0, 2, 1)).astype(jnp.float32)
    xb = xf.astype(jnp.bfloat16)

    # Pre-transpose the 1x1-conv / linear weights once (no in-kernel .T).
    wk_t = params["wk"].T.astype(jnp.bfloat16)
    wq_t = params["wq"].T.astype(jnp.bfloat16)
    wv_t = params["wv"].T.astype(jnp.bfloat16)
    wr_t = params["wr"].T.astype(jnp.bfloat16)

    # Pad the classifier to a lane-dense 128-wide output; slice back at the end.
    F_out = params["wc"].shape[0]
    F_pad = ((F_out + 127) // 128) * 128
    wc_pad = jnp.zeros((F_pad, C), jnp.float32).at[:F_out].set(params["wc"])
    wc_t = wc_pad.T.astype(jnp.bfloat16)                              # (C, F_pad)
    bc_pad = jnp.zeros((1, F_pad), jnp.float32).at[:, :F_out].set(params["bc"])

    scores = spatial_scores(xb, wk_t, wq_t)                           # (N, HW, HW)
    sm = softmax_over_frames(scores)                                  # Softmax2d
    logits = attend_refine_pool_classify(sm, xb, wv_t, wr_t, wc_t, bc_pad,
                                         params["alpha"])[:, 0, :]    # (N, F_pad)
    padded = pad_per_video(logits, seq_lens, n_frames)                # (B, nf, F_pad)
    seq_lens_arr = jnp.asarray(seq_lens, dtype=jnp.int32)
    out_pad = masked_mean_over_frames(padded, seq_lens_arr)           # (B, F_pad)
    return out_pad[:, :F_out]                                         # (B, F_out)


# ----------------------------------------------------------------------------
# Pure-JAX reference (same math, same bf16-input / f32-accumulate precision)
# ----------------------------------------------------------------------------
def reference_forward(feats_nchw, seq_lens, params, n_frames):
    N, C, H, W = feats_nchw.shape
    HW = H * W
    bf16, f32 = jnp.bfloat16, jnp.float32
    xf = jnp.transpose(feats_nchw.reshape(N, C, HW), (0, 2, 1)).astype(f32)
    xb = xf.astype(bf16)

    def proj(w):
        return jnp.dot(xb, w.T.astype(bf16), preferred_element_type=f32)

    k = proj(params["wk"]).astype(bf16)
    q = proj(params["wq"]).astype(bf16)
    v = proj(params["wv"]).astype(bf16)
    scores = jnp.einsum("npc,nqc->npq", k, q,
                        preferred_element_type=f32) * (1.0 / float(C) ** 0.5)
    sm = jax.nn.softmax(scores, axis=0)                               # Softmax2d: dim=-3
    att = jnp.einsum("npq,nqc->npc", sm.astype(bf16), v,
                     preferred_element_type=f32)
    refined = jnp.dot(att.astype(bf16), params["wr"].T.astype(bf16),
                      preferred_element_type=f32)
    out = params["alpha"][0] * refined + xb.astype(f32)
    pooled = out.mean(axis=1)                                         # (N, C)
    logits = jnp.dot(pooled.astype(bf16), params["wc"].T.astype(bf16),
                     preferred_element_type=f32) + params["bc"]       # (N, F_out)
    res, off = [], 0
    for L in seq_lens:
        res.append(logits[off:off + L].mean(axis=0))
        off += L
    return jnp.stack(res)


if __name__ == "__main__":
    # Small shapes consistent with the module:
    #   n_channels 1280 -> 128, feature_map_size 16 (HW=256, lane-dense),
    #   n_frames=4, out_features=7, two videos with org_seq_len=[3,2] -> N=5.
    B = 2
    n_frames = 4
    seq_lens = [3, 2]
    N = sum(seq_lens)
    C = 128
    H = W = 16
    F_out = 7

    key = jax.random.PRNGKey(0)
    k0, k1, k2, k3, k4, k5, k6 = jax.random.split(key, 7)

    # Stand-in for efficientnet_v2_l.features output (N, C, H, W)
    feats = jax.random.normal(k0, (N, C, H, W), dtype=jnp.float32)

    params = {
        "wk": jax.random.normal(k1, (C, C), dtype=jnp.float32) * 0.05,
        "wq": jax.random.normal(k2, (C, C), dtype=jnp.float32) * 0.05,
        "wv": jax.random.normal(k3, (C, C), dtype=jnp.float32) * 0.05,
        "wr": jax.random.normal(k4, (C, C), dtype=jnp.float32) * 0.05,
        # Module initializes alpha=0; use a deterministic nonzero value so the
        # attention path contributes to the output.
        "alpha": jnp.full((1,), 0.5, dtype=jnp.float32),
        "wc": jax.random.normal(k5, (F_out, C), dtype=jnp.float32) * 0.05,
        "bc": jax.random.normal(k6, (1, F_out), dtype=jnp.float32) * 0.05,
    }

    out = effnet_key_frame_forward(feats, seq_lens, params, n_frames)
    out = jax.block_until_ready(out)

    ref = reference_forward(feats, seq_lens, params, n_frames)
    ref = jax.block_until_ready(ref)

    assert out.shape == (B, F_out), out.shape
    assert np.allclose(np.asarray(out), np.asarray(ref), rtol=2e-2, atol=2e-3), (
        np.max(np.abs(np.asarray(out) - np.asarray(ref))))

    print("KERNEL_OK")
</pallas_src>

<mosaic_0001>
module attributes {stable_mosaic.version = 11 : i64} {
  func.func @_probe(%arg0: i32, %arg1: memref<8x128xf32, #tpu.memory_space<vmem>>, %arg2: memref<8x128xf32, #tpu.memory_space<vmem>>) attributes {dimension_semantics = [#tpu.dimension_semantics<arbitrary>], iteration_bounds = array<i64: 1>, scalar_prefetch = 0 : i64, scratch_operands = 0 : i64, tpu.core_type = #tpu.core_type<tc>, window_params = [{pipeline_mode = #tpu.pipeline_mode<synchronous>, transform_indices = @transform_0, window_bounds = array<i64: 8, 128>}, {pipeline_mode = #tpu.pipeline_mode<synchronous>, transform_indices = @transform_1, window_bounds = array<i64: 8, 128>}]} {
    %c0 = arith.constant 0 : index
    %c0_0 = arith.constant 0 : index
    %0 = vector.load %arg1[%c0, %c0_0] : memref<8x128xf32, #tpu.memory_space<vmem>>, vector<8x128xf32>
    %c0_1 = arith.constant 0 : index
    %c0_2 = arith.constant 0 : index
    %1 = vector.load %arg2[%c0_1, %c0_2] : memref<8x128xf32, #tpu.memory_space<vmem>>, vector<8x128xf32>
    tpu.vector_store %arg2[%c0_1, %c0_2], %0 {strides = array<i32>} : memref<8x128xf32, #tpu.memory_space<vmem>>, vector<8x128xf32>,
    return
  }
  func.func @transform_0(%arg0: i32) -> (i32, i32) {
    %c0_i32 = arith.constant 0 : i32
    %c0_i32_0 = arith.constant 0 : i32
    %c0_i32_1 = arith.constant 0 : i32
    return %c0_i32, %c0_i32_0 : i32, i32
  }
  func.func @transform_1(%arg0: i32) -> (i32, i32) {
    %c0_i32 = arith.constant 0 : i32
    %c0_i32_0 = arith.constant 0 : i32
    %c0_i32_1 = arith.constant 0 : i32
    return %c0_i32, %c0_i32_0 : i32, i32
  }
}

module attributes {stable_mosaic.version = 11 : i64} {
  func.func @kernel(%arg0: i32, %arg1: memref<1x256x128xbf16, #tpu.memory_space<vmem>>, %arg2: memref<128x128xbf16, #tpu.memory_space<vmem>>, %arg3: memref<128x128xbf16, #tpu.memory_space<vmem>>, %arg4: memref<1x256x256xf32, #tpu.memory_space<vmem>>) attributes {dimension_semantics = [#tpu.dimension_semantics<parallel>], iteration_bounds = array<i64: 5>, scalar_prefetch = 0 : i64, scratch_operands = 0 : i64, tpu.core_type = #tpu.core_type<tc>, window_params = [{transform_indices = @transform_0, window_bounds = array<i64: 1, 256, 128>}, {pipeline_mode = #tpu.pipeline_mode<synchronous>, transform_indices = @transform_1, window_bounds = array<i64: 128, 128>}, {pipeline_mode = #tpu.pipeline_mode<synchronous>, transform_indices = @transform_2, window_bounds = array<i64: 128, 128>}, {transform_indices = @transform_3, window_bounds = array<i64: 1, 256, 256>}]} {
    %c0 = arith.constant 0 : index
    %c0_0 = arith.constant 0 : index
    %c0_1 = arith.constant 0 : index
    %0 = vector.load %arg1[%c0, %c0_0, %c0_1] : memref<1x256x128xbf16, #tpu.memory_space<vmem>>, vector<1x256x128xbf16>
    %1 = vector.shape_cast %0 : vector<1x256x128xbf16> to vector<256x128xbf16>
    %c0_2 = arith.constant 0 : index
    %c0_3 = arith.constant 0 : index
    %2 = vector.load %arg2[%c0_2, %c0_3] : memref<128x128xbf16, #tpu.memory_space<vmem>>, vector<128x128xbf16>
    %cst = arith.constant dense<0.000000e+00> : vector<256x128xf32>
    %3 = tpu.matmul %1, %2, %cst {dimension_numbers = #tpu.dot_dimension_numbers<[1], [0], [0], [1], [0, 0, 1, 1], [], []>} : vector<256x128xbf16>, vector<128x128xbf16>, vector<256x128xf32> -> vector<256x128xf32>
    %c0_4 = arith.constant 0 : index
    %c0_5 = arith.constant 0 : index
    %4 = vector.load %arg3[%c0_4, %c0_5] : memref<128x128xbf16, #tpu.memory_space<vmem>>, vector<128x128xbf16>
    %cst_6 = arith.constant dense<0.000000e+00> : vector<256x128xf32>
    %5 = tpu.matmul %1, %4, %cst_6 {dimension_numbers = #tpu.dot_dimension_numbers<[1], [0], [0], [1], [0, 0, 1, 1], [], []>} : vector<256x128xbf16>, vector<128x128xbf16>, vector<256x128xf32> -> vector<256x128xf32>
    %6 = arith.truncf %3 : vector<256x128xf32> to vector<256x128xbf16>
    %7 = arith.truncf %5 : vector<256x128xf32> to vector<256x128xbf16>
    %cst_7 = arith.constant dense<0.000000e+00> : vector<256x256xf32>
    %8 = tpu.matmul %6, %7, %cst_7 {dimension_numbers = #tpu.dot_dimension_numbers<[1], [1], [0], [0], [0, 0, 1, 0], [], []>} : vector<256x128xbf16>, vector<256x128xbf16>, vector<256x256xf32> -> vector<256x256xf32>
    %cst_8 = arith.constant 0.0883883461 : f32
    %9 = vector.broadcast %cst_8 : f32 to vector<256x256xf32>
    %10 = arith.mulf %8, %9 : vector<256x256xf32>
    %c0_9 = arith.constant 0 : index
    %c0_10 = arith.constant 0 : index
    %c0_11 = arith.constant 0 : index
    %11 = vector.load %arg4[%c0_9, %c0_10, %c0_11] : memref<1x256x256xf32, #tpu.memory_space<vmem>>, vector<1x256x256xf32>
    %12 = vector.shape_cast %11 : vector<1x256x256xf32> to vector<256x256xf32>
    %13 = vector.shape_cast %10 : vector<256x256xf32> to vector<1x256x256xf32>
    tpu.vector_store %arg4[%c0_9, %c0_10, %c0_11], %13 {strides = array<i32>} : memref<1x256x256xf32, #tpu.memory_space<vmem>>, vector<1x256x256xf32>,
    return
  }
  func.func @transform_0(%arg0: i32) -> (i32, i32, i32) {
    %c0_i32 = arith.constant 0 : i32
    %c0_i32_0 = arith.constant 0 : i32
    %c0_i32_1 = arith.constant 0 : i32
    return %arg0, %c0_i32, %c0_i32_0 : i32, i32, i32
  }
  func.func @transform_1(%arg0: i32) -> (i32, i32) {
    %c0_i32 = arith.constant 0 : i32
    %c0_i32_0 = arith.constant 0 : i32
    %c0_i32_1 = arith.constant 0 : i32
    return %c0_i32, %c0_i32_0 : i32, i32
  }
  func.func @transform_2(%arg0: i32) -> (i32, i32) {
    %c0_i32 = arith.constant 0 : i32
    %c0_i32_0 = arith.constant 0 : i32
    %c0_i32_1 = arith.constant 0 : i32
    return %c0_i32, %c0_i32_0 : i32, i32
  }
  func.func @transform_3(%arg0: i32) -> (i32, i32, i32) {
    %c0_i32 = arith.constant 0 : i32
    %c0_i32_0 = arith.constant 0 : i32
    %c0_i32_1 = arith.constant 0 : i32
    return %arg0, %c0_i32, %c0_i32_0 : i32, i32, i32
  }
}

</mosaic_0001>

<bundles_post_ra>
// kernel: tpu_custom_call.1
= control target key start
LH: loop header
LB: loop body
LE: loop exit
PB: predicated region body
PF: predicated region fallthrough
CT: control target
= control target key end

     0   :  { %6 = vsyncpa [#allocation3], 0  ;;  %s102_s0 = inlined_call_operand.hbm [shape: f32[8,128], index: 0, kind: input, shape index: {}]   ;;  %s103_s1 = inlined_call_operand.hbm [shape: f32[8,128], index: 1, kind: output, shape index: {}]  }
   0x1   :  { %7 = vsyncpa [#allocation4], 0  ;;  %s84_s6 = smov [#allocation2]  }
   0x2   :  { %s14_s7 = sshll.u32 %s84_s6, 4  ;;  %s15_s7 = int_to_ptr.vmem [resolvable:$true] %s14_s7 }
   0x3   :  { %s48_s8 = scalar_lea.vmem %s15_s7, 128  ;;  %p53_p1 = scmp.lt.s32.totalorder %s15_s7, %s15_s7 }
   0x4   :  { %p49_p0 = scmp.ne.s32.totalorder %s15_s7, %s48_s8  ;;  %p54_p2 = scmp.lt.s32.totalorder %s48_s8, %s48_s8 }
   0x6   :  { %p55_p3 = por %p54_p2, %p53_p1 }
   0x8   :  { %p56_p4 = pnand %p55_p3, %p49_p0 }
   0xa   :  { %59 = shalt.err (!%p56_p4)
}
   0xb   :  { %17 = dma.hbm_to_vmem [thread:$0]  %s102_s0, 128, %s15_s7, [#allocation3]  }
   0xc   :  { %80 = dma.done.wait [#allocation3], 128  }
   0xd   :  { %81 = vsyncadd [#allocation3], 4294967168  ;;  %s85_s11 = smov [#allocation5]   ;;  %v21_v0 = vld [vmem:[#allocation2] sm:$0xff] }
   0xe   :  { %s29_s12 = sshll.u32 %s85_s11, 4  ;;  %22 = vst [vmem:[#allocation5] sm:$0xff] %v21_v0  ;;  %s30_s12 = int_to_ptr.vmem [resolvable:$true] %s29_s12 }
   0xf   :  { %s60_s13 = scalar_lea.vmem %s30_s12, 128  ;;  %p65_p6 = scmp.lt.s32.totalorder %s30_s12, %s30_s12 }
  0x10   :  { %p61_p5 = scmp.ne.s32.totalorder %s30_s12, %s60_s13  ;;  %p66_p7 = scmp.lt.s32.totalorder %s60_s13, %s60_s13 }
  0x12   :  { %p67_p8 = por %p66_p7, %p65_p6 }
  0x14   :  { %p68_p9 = pnand %p67_p8, %p61_p5 }
  0x16   :  { %71 = shalt.err (!%p68_p9)
}
  0x17   :  { %32 = dma.vmem_to_hbm [thread:$0]  %s30_s12, 128, %s103_s1, [#allocation4]  }
  0x18   :  { %82 = dma.done.wait [#allocation4], 128  }
  0x19   :  { %83 = vsyncadd [#allocation4], 4294967168 }
  0x1a   :  { %36 = vsyncpa [#allocation3], 1 }
  0x1b   :  { %37 = vsyncpa [#allocation4], 1 }

// kernel: tpu_custom_call.1
= control target key start
LH: loop header
LB: loop body
LE: loop exit
PB: predicated region body
PF: predicated region fallthrough
CT: control target
= control target key end

     0   :  { %8 = vsyncpa [#allocation3], 0  ;;  %s2146_s0 = inlined_call_operand.hbm [shape: bf16[5,256,128], index: 0, kind: input, shape index: {}]   ;;  %s2147_s1 = inlined_call_operand.hbm [shape: bf16[128,128], index: 1, kind: input, shape index: {}]   ;;  %s2148_s2 = inlined_call_operand.hbm [shape: bf16[128,128], index: 2, kind: input, shape index: {}]   ;;  %s2149_s3 = inlined_call_operand.hbm [shape: f32[5,256,256], index: 3, kind: output, shape index: {}]  }
   0x1   :  { %10 = vsyncpa [#allocation3 + $0x1], 0 }
   0x2   :  { %11 = vsyncpa [#allocation6], 0 }
   0x3   :  { %12 = vsyncpa [#allocation4], 0 }
   0x4   :  { %14 = vsyncpa [#allocation4 + $0x1], 0  ;;  %s1797_s12 = smov 0   ;;  %s1799_s13 = smov 0  }
   0x5   :  { %s1801_s14 = smov 0   ;;  %s1803_s15 = smov 0  }
   0x6 LB: > { %s1818_s16 = sadd.s32 4294967295, %s1767_s15   ;;  %s1256_s17 = sadd.s32 4294967294, %s1767_s15   ;;  %s1767_s15 = sphi %s1803_s15, %s2169_s15   ;;  %s1763_s14 = sphi %s1801_s14, %s2168_s14   ;;  %s1759_s13 = sphi %s1799_s13, %s2167_s13   ;;  %s1755_s12 = sphi %s1797_s12, %s2166_s12  }
   0x7   : > { %p40_p0 = scmp.ne.s32.totalorder %s1759_s13, %s1755_s12  ;;  %p2150_p1 = scmp.eq.s32.totalorder %s1818_s16, 0 }
   0x8   : > { %p106_p2 = scmp.eq.s32.totalorder %s1818_s16, 4  ;;  %p112_p3 = scmp.eq.s32.totalorder %s1256_s17, 4 }
   0x9   : > { %p1827_p4 = por %p2150_p1, %p40_p0  ;;  %p1257_p5 = scmp.ge.s32.totalorder %s1767_s15, 1 }
   0xa   : > { %p1832_p6 = por %p112_p3, %p40_p0  ;;  %p119_p7 = scmp.lt.s32.totalorder %s1767_s15, 6 }
   0xb   : > { %s2154_s18 = scalar_select %p1827_p4, 1, 0 }
   0xc   : > { %s2155_s19 = scalar_select %p1832_p6, 1, 0 }
   0xd   : > { %p1837_p8 = pnand %p1257_p5, %p119_p7  ;;  %s1769_s21 = smov [#allocation5]  }
   0xe   : > { %s131_s22 = sshll.u32 %s1769_s21, 4  ;;  %s1770_s24 = smov [#allocation7]   ;;  %s132_s22 = int_to_ptr.vmem [resolvable:$true] %s131_s22 }
   0xf   : > { %s2156_s20 = scalar_select %p1837_p8, 1, 0 }
  0x10   : > { %p1528_p9 = pneg %p1837_p8  ;;  %s144_s25 = sshll.u32 %s1770_s24, 4  ;;  %s145_s25 = int_to_ptr.vmem [resolvable:$true] %s144_s25 }
  0x11   : > { %s1630_s26 = scalar_lea.vmem %s132_s22, 1024  ;;  %p1638_p3 = scmp.lt.s32.totalorder %s132_s22, %s132_s22 }
  0x12   : > { %p1845_p10 = pnand %p1528_p9, %p2150_p1  ;;  %p1631_p12 = scmp.ne.s32.totalorder %s132_s22, %s1630_s26 }
  0x13   : > { %p1639_p5 = scmp.lt.s32.totalorder %s1630_s26, %s1630_s26 }
  0x14   : > { %p1621_p11 = pneg %p1845_p10 }
  0x15   : > { %p1640_p7 = por %p1639_p5, %p1638_p3 }
  0x16   : > { %p1633_p13 = pnand %p1631_p12, %p1621_p11 }
  0x18   : > { %p1634_p0 = pneg %p1633_p13 }
  0x1a   : > { %p1641_p9 = pnand %p1640_p7, %p1634_p0 }
  0x1c   : > { %1644 = shalt.err (!%p1641_p9)
}
  0x1d   : > { %s1771_s27 = smov 64   ;;  %s1772_s28 = smov 4  }
  0x1e   : > { %1531 = dma.hbm_to_vmem [thread:$0]  (!%p1845_p10), %s2147_s1, 1024, %s132_s22, [#allocation6], %s1771_s27, %s1771_s27, %s1772_s28  }
  0x1f   : > { %s1656_s4 = scalar_lea.vmem %s145_s25, 1024  ;;  %p1664_p0 = scmp.lt.s32.totalorder %s145_s25, %s145_s25 }
  0x20   : > { %p1657_p12 = scmp.ne.s32.totalorder %s145_s25, %s1656_s4  ;;  %p1665_p5 = scmp.lt.s32.totalorder %s1656_s4, %s1656_s4 }
  0x22   : > { %p1659_p13 = pnand %p1657_p12, %p1621_p11  ;;  %p1666_p7 = por %p1665_p5, %p1664_p0 }
  0x24   : > { %p1660_p3 = pneg %p1659_p13 }
  0x26   : > { %p1667_p9 = pnand %p1666_p7, %p1660_p3 }
  0x28   : > { %1670 = shalt.err (!%p1667_p9)
}
  0x29   : > { %1534 = dma.hbm_to_vmem [thread:$0]  (!%p1845_p10), %s2148_s2, 1024, %s145_s25, [#allocation6], %s1771_s27, %s1771_s27, %s1772_s28  }
  0x2a   : > { %s1874_s7 = sadd.s32 1, %s1767_s15   ;;  %s27_s8 = sadd.s32 1, %s1763_s14 }
  0x2b   : > { %s24_s9 = ssub.s32 %s1767_s15, %s1874_s7  ;;  %p34_p11 = scmp.ne.s32.totalorder %s1763_s14, %s1759_s13 }
  0x2c   : > { %p25_p12 = scmp.eq.s32.totalorder %s24_s9, 0  ;;  %p35_p13 = scmp.eq.s32.totalorder %s1767_s15, 0 }
  0x2d   : > { %p1884_p3 = por %p106_p2, %p34_p11  ;;  %p1545_p0 = scmp.lt.s32.totalorder %s1767_s15, 5 }
  0x2e   : > { %s1890_s11 = scalar_select %p25_p12, %s1763_s14, %s27_s8  }
  0x2f   : > { %s2158_s10 = scalar_select %p1884_p3, 1, 0 }
  0x30   : > { %p36_p5 = por %p35_p13, %p34_p11  ;;  %s158_s17 = sand.u32 1, %s1763_s14  }
  0x31   : > { %s1261_s21 = sshll.u32 %s158_s17, 7  ;;  %s1306_s22 = sshll.u32 %s1767_s15, 11 }
  0x32   : > { %s1897_s25 = scalar_lea.hbm %s2146_s0, %s1306_s22  ;;  %s162_s26 = scalar_lea.vmem [#allocation2], %s1261_s21 }
  0x33   : > { %s169_s29 = sshll.u32 %s162_s26, 4  ;;  %p1901_p2 = pnand %p1545_p0, %p36_p5  ;;  %s1899_s29 = int_to_ptr.vmem [resolvable:$true] %s169_s29 }
  0x34   : > { %s1905_s4 = scalar_lea.sflag [#allocation3], %s158_s17  ;;  %s1671_s5 = scalar_lea.hbm %s1897_s25, 2048 }
  0x35   : > { %p1672_p10 = scmp.ne.s32.totalorder %s1897_s25, %s1671_s5  ;;  %p1673_p7 = pneg %p1901_p2 }
  0x36   : > { %s1676_s9 = scalar_lea.hbm %s2146_s0, 10240  ;;  %p1677_p12 = scmp.lt.s32.totalorder %s1897_s25, %s2146_s0 }
  0x37   : > { %p1674_p9 = pnand %p1673_p7, %p1672_p10  ;;  %p1678_p13 = scmp.lt.s32.totalorder %s1676_s9, %s1671_s5 }
  0x39   : > { %p1675_p11 = pneg %p1674_p9  ;;  %p1679_p0 = por %p1678_p13, %p1677_p12 }
  0x3b   : > { %p1680_p5 = pnand %p1679_p0, %p1675_p11 }
  0x3d   : > { %1683 = shalt.err (!%p1680_p5)
}
  0x3e   : > { %s1684_s17 = scalar_lea.vmem %s1899_s29, 2048  ;;  %s1773_s23 = smov [#allocation2]  }
  0x3f   : > { %p1685_p1 = scmp.ne.s32.totalorder %s1899_s29, %s1684_s17  ;;  %s1689_s24 = sshll.u32 %s1773_s23, 4  ;;  %s1690_s24 = int_to_ptr.vmem [resolvable:$false] %s1689_s24 }
  0x40   : > { %s1691_s26 = scalar_lea.vmem %s1690_s24, 4096  ;;  %p1692_p9 = scmp.lt.s32.totalorder %s1899_s29, %s1690_s24 }
  0x41   : > { %p1687_p6 = pnand %p1685_p1, %p1673_p7  ;;  %p1693_p3 = scmp.lt.s32.totalorder %s1691_s26, %s1684_s17 }
  0x43   : > { %p1688_p10 = pneg %p1687_p6  ;;  %p1694_p4 = por %p1693_p3, %p1692_p9 }
  0x45   : > { %p1695_p8 = pnand %p1694_p4, %p1688_p10 }
  0x47   : > { %1698 = shalt.err (!%p1695_p8)
}
  0x48   : > { %1538 = dma.hbm_to_vmem [thread:$0]  (!%p1901_p2), %s1897_s25, 2048, %s1899_s29, %s1905_s4, %s1771_s27, %s1771_s27, %s1772_s28  }
  0x49   : > { %p2160_p1 = scmp.ne.s32.totalorder %s2156_s20, 0 }
  0x4a   : > { %s1932_s5 = sand.u32 (!%p2160_p1), 1, %s1759_s13   ;;  %p2161_p4 = scmp.ne.s32.totalorder (!%p2160_p1), %s2154_s18, 0 }
  0x4b   : > { %181 = sbr.rel (%p2160_p1) target bundleno = 707 (0x2c3), region = 32  ;;  %s1265_s6 = sshll.u32 (!%p2160_p1), %s1932_s5, 7 }
  0x4c   : > { %s184_s8 = scalar_lea.sflag (!%p2160_p1), [#allocation3], %s1932_s5  ;;  %s1936_s9 = scalar_lea.vmem (!%p2160_p1), [#allocation2], %s1265_s6 }
  0x50   : > { %1742 = dma.done.wait (%p2161_p4), %s184_s8, 2048  }
  0x51   : > { %1744 = vsyncadd (%p2161_p4), %s184_s8, 4294965248  ;;  %p2162_p6 = scmp.eq.s32.totalorder %s1818_s16, 0 }
  0x53   : > { %1746 = dma.done.wait (%p2162_p6), [#allocation6], 2048   ;;  %p2163_p8 = pmov %p2162_p6 }
  0x54   : > { %v1587_v0 = vld [vmem:[#allocation7 + $0x38] sm:$0xff]   ;;  %v1588_v1 = vld [vmem:[#allocation7 + $0x30] sm:$0xff]   ;;  %v1589_v2 = vld [vmem:[#allocation7 + $0x28] sm:$0xff]   ;;  %s1268_s18 = sshll.u32 %s1932_s5, 9  ;;  %s1307_s27 = sshll.u32 %s1818_s16, 13 }
  0x55   : > { %1748 = vsyncadd (%p2163_p8), [#allocation6], 4294965248  ;;  %1452 = vmatprep.subr.bf16.mxu1 %v1587_v0  ;;  %v1590_v3 = vld [vmem:[#allocation7 + $0x20] sm:$0xff]   ;;  %v1591_v5 = vld [vmem:[#allocation7 + $0x18] sm:$0xff]   ;;  %s2031_s20 = scalar_lea.vmem [#allocation8], %s1268_s18  ;;  %s2098_s30 = scalar_lea.hbm %s2149_s3, %s1307_s27 }
  0x56   : > { %1453 = vmatpush3.bf16.msra.mxu1 %v1587_v0  ;;  %v1595_v4 = vld [vmem:[%s1936_s9] sm:$0xff]   ;;  %v1592_v6 = vld [vmem:[#allocation7 + $0x10] sm:$0xff]   ;;  %v1593_v7 = vld [vmem:[#allocation7 + $0x8] sm:$0xff]   ;;  %s1164_s28 = sshll.u32 %s2031_s20, 4  ;;  %s1151_s16 = scalar_lea.sflag [#allocation4], %s1932_s5  ;;  %s2100_s28 = int_to_ptr.vmem [resolvable:$true] %s1164_s28 }
  0x57   : > { %1454 = vmatprep.subr.bf16.mxu1 %v1588_v1  ;;  %1468 = vmatprep.mubr.bf16.mxu1 %v1595_v4  ;;  %v1608_v8 = vld [vmem:[#allocation5 + $0x38] sm:$0xff]   ;;  %v1610_v9 = vld [vmem:[#allocation5 + $0x30] sm:$0xff]   ;;  %v1594_v10 = vld [vmem:[#allocation7] sm:$0xff]   ;;  %s1699_s4 = scalar_lea.vmem %s2100_s28, 8192  ;;  %p2164_p2 = scmp.ne.s32.totalorder %s2158_s10, 0 }
  0x58   : > { %1420 = vmatprep.mubr.bf16.mxu0 %v1595_v4  ;;  %1404 = vmatprep.subr.bf16.mxu0 %v1608_v8  ;;  %v1612_v11 = vld [vmem:[#allocation5 + $0x28] sm:$0xff]   ;;  %v1614_v12 = vld [vmem:[#allocation5 + $0x20] sm:$0xff]   ;;  %v1597_v14 = vld [vmem:[%s1936_s9 + $0x10] sm:$0xff]   ;;  %p1700_p3 = scmp.ne.s32.totalorder %s2100_s28, %s1699_s4  ;;  %s1774_s21 = smov [#allocation8]  }
  0x59   : > { %1405 = vmatpush3.bf16.msra.mxu0 %v1608_v8  ;;  %v1596_v13 = vld [vmem:[%s1936_s9 + $0x8] sm:$0xff]   ;;  %v1615_v15 = vld [vmem:[#allocation5 + $0x18] sm:$0xff]   ;;  %v1616_v16 = vld [vmem:[#allocation5 + $0x10] sm:$0xff]   ;;  %s1703_s22 = sshll.u32 %s1774_s21, 4  ;;  %s1704_s22 = int_to_ptr.vmem [resolvable:$false] %s1703_s22 }
  0x5a   : > { %1455 = vmatpush3.bf16.msra.mxu1 %v1588_v1  ;;  %1406 = vmatprep.subr.bf16.mxu0 %v1610_v9  ;;  %v1598_v17 = vld [vmem:[%s1936_s9 + $0x18] sm:$0xff]   ;;  %v1599_v18 = vld [vmem:[%s1936_s9 + $0x20] sm:$0xff]   ;;  %v1617_v19 = vld [vmem:[#allocation5 + $0x8] sm:$0xff]   ;;  %p1701_p7 = pnand %p1700_p3, %p2164_p2  ;;  %s1705_s17 = scalar_lea.vmem %s1704_s22, 16384 }
  0x5b   : > { %1456 = vmatprep.subr.bf16.mxu1 %v1589_v2  ;;  %v1618_v20 = vld [vmem:[#allocation5] sm:$0xff]   ;;  %v1600_v21 = vld [vmem:[%s1936_s9 + $0x28] sm:$0xff]   ;;  %v1601_v22 = vld [vmem:[%s1936_s9 + $0x30] sm:$0xff]   ;;  %p1706_p12 = scmp.lt.s32.totalorder %s2100_s28, %s1704_s22  ;;  %p1707_p13 = scmp.lt.s32.totalorder %s1705_s17, %s1699_s4 }
  0x5c   : > { %v1602_v23 = vld [vmem:[%s1936_s9 + $0x38] sm:$0xff]   ;;  %v1603_v24 = vld [vmem:[%s1936_s9 + $0x40] sm:$0xff]   ;;  %v1604_v25 = vld [vmem:[%s1936_s9 + $0x48] sm:$0xff]   ;;  %p1702_p11 = pneg %p1701_p7 }
  0x5d   : > { %1407 = vmatpush3.bf16.msra.mxu0 %v1610_v9  ;;  %v1605_v26 = vld [vmem:[%s1936_s9 + $0x50] sm:$0xff]   ;;  %v1606_v27 = vld [vmem:[%s1936_s9 + $0x58] sm:$0xff]   ;;  %v1607_v28 = vld [vmem:[%s1936_s9 + $0x60] sm:$0xff]   ;;  %p1708_p0 = por %p1707_p13, %p1706_p12 }
  0x5e   : > { %1457 = vmatpush3.bf16.msra.mxu1 %v1589_v2  ;;  %1408 = vmatprep.subr.bf16.mxu0 %v1612_v11  ;;  %v1609_v29 = vld [vmem:[%s1936_s9 + $0x68] sm:$0xff]   ;;  %v1611_v30 = vld [vmem:[%s1936_s9 + $0x70] sm:$0xff]   ;;  %v1613_v31 = vld [vmem:[%s1936_s9 + $0x78] sm:$0xff]  }
  0x5f   : > { %1458 = vmatprep.subr.bf16.mxu1 %v1590_v3  ;;  %p1709_p5 = pnand %p1708_p0, %p1702_p11 }
  0x61   : > { %1409 = vmatpush3.bf16.msra.mxu0 %v1612_v11 }
  0x62   : > { %1459 = vmatpush3.bf16.msra.mxu1 %v1590_v3  ;;  %1410 = vmatprep.subr.bf16.mxu0 %v1614_v12 }
  0x63   : > { %1460 = vmatprep.subr.bf16.mxu1 %v1591_v5 }
  0x65   : > { %1411 = vmatpush3.bf16.msra.mxu0 %v1614_v12 }
  0x66   : > { %1461 = vmatpush3.bf16.msra.mxu1 %v1591_v5  ;;  %1412 = vmatprep.subr.bf16.mxu0 %v1615_v15 }
  0x67   : > { %1462 = vmatprep.subr.bf16.mxu1 %v1592_v6 }
  0x69   : > { %1413 = vmatpush3.bf16.msra.mxu0 %v1615_v15 }
  0x6a   : > { %1463 = vmatpush3.bf16.msra.mxu1 %v1592_v6  ;;  %1414 = vmatprep.subr.bf16.mxu0 %v1616_v16 }
  0x6b   : > { %1464 = vmatprep.subr.bf16.mxu1 %v1593_v7 }
  0x6d   : > { %1415 = vmatpush3.bf16.msra.mxu0 %v1616_v16 }
  0x6e   : > { %1465 = vmatpush3.bf16.msra.mxu1 %v1593_v7  ;;  %1416 = vmatprep.subr.bf16.mxu0 %v1617_v19 }
  0x6f   : > { %1466 = vmatprep.subr.bf16.mxu1 %v1594_v10 }
  0x71   : > { %1417 = vmatpush3.bf16.msra.mxu0 %v1617_v19 }
  0x72   : > { %1467 = vmatpush3.bf16.msra.mxu1 %v1594_v10  ;;  %1418 = vmatprep.subr.bf16.mxu0 %v1618_v20 }
  0x75   : > { %1469 = vmatmul.mubr.bf16.vlgmr.msra.gmra.mxu1 %v1596_v13  ;;  %1419 = vmatpush3.bf16.msra.mxu0 %v1618_v20 }
  0x76   : > { %1472 = vmatprep.mubr.bf16.mxu1 %v1597_v14 }
  0x78   : > { %1421 = vmatmul.mubr.bf16.vlgmr.msra.gmra.mxu0 %v1596_v13 }
  0x79   : > { %1424 = vmatprep.mubr.bf16.mxu0 %v1597_v14 }
  0x7d   : > { %1473 = vmatmul.mubr.bf16.gmra.mxu1 %v1598_v17 }
  0x7e   : > { %1476 = vmatprep.mubr.bf16.mxu1 %v1599_v18 }
  0x80   : > { %1425 = vmatmul.mubr.bf16.gmra.mxu0 %v1598_v17 }
  0x81   : > { %1428 = vmatprep.mubr.bf16.mxu0 %v1599_v18 }
  0x85   : > { %1477 = vmatmul.mubr.bf16.gmra.mxu1 %v1600_v21 }
  0x86   : > { %1480 = vmatprep.mubr.bf16.mxu1 %v1601_v22 }
  0x88   : > { %1429 = vmatmul.mubr.bf16.gmra.mxu0 %v1600_v21 }
  0x89   : > { %1432 = vmatprep.mubr.bf16.mxu0 %v1601_v22 }
  0x8d   : > { %1481 = vmatmul.mubr.bf16.gmra.mxu1 %v1602_v23 }
  0x8e   : > { %1484 = vmatprep.mubr.bf16.mxu1 %v1603_v24 }
  0x90   : > { %1433 = vmatmul.mubr.bf16.gmra.mxu0 %v1602_v23 }
  0x91   : > { %1436 = vmatprep.mubr.bf16.mxu0 %v1603_v24 }
  0x95   : > { %1485 = vmatmul.mubr.bf16.gmra.mxu1 %v1604_v25 }
  0x96   : > { %1488 = vmatprep.mubr.bf16.mxu1 %v1605_v26 }
  0x98   : > { %1437 = vmatmul.mubr.bf16.gmra.mxu0 %v1604_v25 }
  0x99   : > { %1440 = vmatprep.mubr.bf16.mxu0 %v1605_v26 }
  0x9d   : > { %1489 = vmatmul.mubr.bf16.gmra.mxu1 %v1606_v27 }
  0x9e   : > { %1492 = vmatprep.mubr.bf16.mxu1 %v1607_v28 }
  0xa0   : > { %1441 = vmatmul.mubr.bf16.gmra.mxu0 %v1606_v27 }
  0xa1   : > { %1444 = vmatprep.mubr.bf16.mxu0 %v1607_v28 }
  0xa5   : > { %1493 = vmatmul.mubr.bf16.gmra.mxu1 %v1609_v29 }
  0xa6   : > { %1496 = vmatprep.mubr.bf16.mxu1 %v1611_v30 }
  0xa8   : > { %1445 = vmatmul.mubr.bf16.gmra.mxu0 %v1609_v29 }
  0xa9   : > { %1448 = vmatprep.mubr.bf16.mxu0 %v1611_v30 }
  0xad   : > { %1497 = vmatmul.mubr.bf16.gmra.mxu1 %v1613_v31 }
  0xb0   : > { %1449 = vmatmul.mubr.bf16.gmra.mxu0 %v1613_v31 }
 0x135   : > { %v1470_v32 = vpop.f32.mrf.mxu1 }
 0x137   : > { %v670_v33 = vpop.f32.mrf.mxu1 }
 0x138   : > { %v1422_v47 = vpop.f32.mrf.mxu0 }
 0x139   : > { %v1471_v34 = vpop.f32.mrf.mxu1 }
 0x13a   : > { %v1962_v35 = vpack.c.bf16 %v1471_v34, %v1470_v32  ;;  %v445_v49 = vpop.f32.mrf.mxu0 }
 0x13b   : > { %v673_v36 = vpop.f32.mrf.mxu1 }
 0x13c   : > { %v1964_v37 = vpack.c.bf16 %v673_v36, %v670_v33  ;;  %v1423_v51 = vpop.f32.mrf.mxu0 }
 0x13d   : > { %v1474_v38 = vpop.f32.mrf.mxu1  ;;  %v1978_v53 = vpack.c.bf16 %v1423_v51, %v1422_v47 }
 0x13e   : > { %v448_v54 = vpop.f32.mrf.mxu0 }
 0x13f   : > { %v686_v39 = vpop.f32.mrf.mxu1  ;;  %v1980_v56 = vpack.c.bf16 %v448_v54, %v445_v49 }
 0x140   : > { %v1426_v57 = vpop.f32.mrf.mxu0 }
 0x141   : > { %v1475_v40 = vpop.f32.mrf.mxu1  ;;  %1372 = vmatprep.mubr.bf16.mxu0 %v1980_v56 }
 0x142   : > { %v1966_v41 = vpack.c.bf16 %v1475_v40, %v1474_v38  ;;  %v461_v59 = vpop.f32.mrf.mxu0 }
 0x143   : > { %v689_v42 = vpop.f32.mrf.mxu1 }
 0x144   : > { %v1968_v43 = vpack.c.bf16 %v689_v42, %v686_v39  ;;  %v1427_v61 = vpop.f32.mrf.mxu0 }
 0x145   : > { %v1970_v44 = vpop.f32.mrf.mxu1  ;;  %v1983_v63 = vpack.c.bf16 %v1427_v61, %v1426_v57 }
 0x146   : > { %v464_v0 = vpop.f32.mrf.mxu0 }
 0x147   : > { %v1972_v45 = vpop.f32.mrf.mxu1  ;;  %v1985_v2 = vpack.c.bf16 %v464_v0, %v461_v59 }
 0x148   : > { %v1430_v4 = vpop.f32.mrf.mxu0 }
 0x149   : > { %v1974_v46 = vpop.f32.mrf.mxu1 }
 0x14a   : > { %v477_v7 = vpop.f32.mrf.mxu0  ;;  %v818_v49 = vpack.c.bf16 %v1974_v46, %v1970_v44 }
 0x14b   : > { %v1976_v48 = vpop.f32.mrf.mxu1 }
 0x14c   : > { %v1431_v9 = vpop.f32.mrf.mxu0 }
 0x14d   : > { %v1482_v50 = vpop.f32.mrf.mxu1  ;;  %v1991_v11 = vpack.c.bf16 %v1431_v9, %v1430_v4 }
 0x14e   : > { %v480_v12 = vpop.f32.mrf.mxu0 }
 0x14f   : > { %v718_v52 = vpop.f32.mrf.mxu1  ;;  %v1993_v14 = vpack.c.bf16 %v480_v12, %v477_v7 }
 0x150   : > { %v1434_v15 = vpop.f32.mrf.mxu0 }
 0x151   : > { %v1483_v55 = vpop.f32.mrf.mxu1 }
 0x152   : > { %v493_v17 = vpop.f32.mrf.mxu0  ;;  %v820_v38 = vpack.c.bf16 %v1483_v55, %v1482_v50  ;;  %v817_v50 = vpack.c.bf16 %v1976_v48, %v1972_v45 }
 0x153   : > { %v721_v58 = vpop.f32.mrf.mxu1 }
 0x154   : > { %v1435_v19 = vpop.f32.mrf.mxu0  ;;  %v819_v42 = vpack.c.bf16 %v721_v58, %v718_v52 }
 0x155   : > { %v1486_v60 = vpop.f32.mrf.mxu1  ;;  %v1995_v21 = vpack.c.bf16 %v1435_v19, %v1434_v15 }
 0x156   : > { %v496_v22 = vpop.f32.mrf.mxu0 }
 0x157   : > { %v734_v62 = vpop.f32.mrf.mxu1  ;;  %v1997_v24 = vpack.c.bf16 %v496_v22, %v493_v17 }
 0x158   : > { %v1438_v25 = vpop.f32.mrf.mxu0 }
 0x159   : > { %v1487_v1 = vpop.f32.mrf.mxu1 }
 0x15a   : > { %v1987_v3 = vpack.c.bf16 %v1487_v1, %v1486_v60  ;;  %v509_v27 = vpop.f32.mrf.mxu0 }
 0x15b   : > { %v737_v5 = vpop.f32.mrf.mxu1 }
 0x15c   : > { %v1989_v6 = vpack.c.bf16 %v737_v5, %v734_v62  ;;  %v1439_v29 = vpop.f32.mrf.mxu0 }
 0x15d   : > { %v1490_v8 = vpop.f32.mrf.mxu1  ;;  %v806_v31 = vpack.c.bf16 %v1439_v29, %v1438_v25 }
 0x15e   : > { %v512_v32 = vpop.f32.mrf.mxu0 }
 0x15f   : > { %v750_v10 = vpop.f32.mrf.mxu1  ;;  %v805_v34 = vpack.c.bf16 %v512_v32, %v509_v27 }
 0x160   : > { %v1442_v44 = vpop.f32.mrf.mxu0 }
 0x161   : > { %v1491_v13 = vpop.f32.mrf.mxu1  ;;  %1388 = vmatprep.mubr.bf16.mxu1 %v805_v34 }
 0x162   : > { %v824_v54 = vpack.c.bf16 %v1491_v13, %v1490_v8 }
 0x163   : > { %v753_v16 = vpop.f32.mrf.mxu1 }
 0x164   : > { %v823_v52 = vpack.c.bf16 %v753_v16, %v750_v10 }
 0x165   : > { %v1494_v18 = vpop.f32.mrf.mxu1 }
 0x167   : > { %v766_v20 = vpop.f32.mrf.mxu1 }
 0x169   : > { %v1495_v23 = vpop.f32.mrf.mxu1 }
 0x16a   : > { %v826_v47 = vpack.c.bf16 %v1495_v23, %v1494_v18 }
 0x16b   : > { %v769_v26 = vpop.f32.mrf.mxu1 }
 0x16c   : > { %v825_v51 = vpack.c.bf16 %v769_v26, %v766_v20 }
 0x16d   : > { %v1498_v28 = vpop.f32.mrf.mxu1 }
 0x16f   : > { %v782_v30 = vpop.f32.mrf.mxu1 }
 0x171   : > { %v1499_v33 = vpop.f32.mrf.mxu1 }
 0x172   : > { %v828_v36 = vpack.c.bf16 %v1499_v33, %v1498_v28 }
 0x173   : > { %v785_v39 = vpop.f32.mrf.mxu1 }
 0x174   : > { %v827_v40 = vpack.c.bf16 %v785_v39, %v782_v30  ;;  %1356 = vmatprep.subr.bf16.mxu0 %v828_v36  ;;  %1500 = vmatprep.subr.bf16.mxu1 %v828_v36 }
 0x175   : > { %1357 = vmatpush3.bf16.xpose.msra.mxu0 %v820_v38  ;;  %1508 = vmatpush3.bf16.xpose.msra.mxu1 %v820_v38 }
 0x176   : > { %1358 = vmatprep.subr.bf16.mxu0 %v827_v40  ;;  %1501 = vmatprep.subr.bf16.mxu1 %v827_v40 }
 0x17d   : > { %1359 = vmatpush3.bf16.xpose.msra.mxu0 %v819_v42  ;;  %1509 = vmatpush3.bf16.xpose.msra.mxu1 %v819_v42 }
 0x17e   : > { %1360 = vmatprep.subr.bf16.mxu0 %v826_v47  ;;  %1502 = vmatprep.subr.bf16.mxu1 %v826_v47 }
 0x185   : > { %1361 = vmatpush3.bf16.xpose.msra.mxu0 %v818_v49  ;;  %1510 = vmatpush3.bf16.xpose.msra.mxu1 %v818_v49 }
 0x186   : > { %1362 = vmatprep.subr.bf16.mxu0 %v825_v51  ;;  %1503 = vmatprep.subr.bf16.mxu1 %v825_v51 }
 0x18d   : > { %1363 = vmatpush3.bf16.xpose.msra.mxu0 %v817_v50  ;;  %1511 = vmatpush3.bf16.xpose.msra.mxu1 %v817_v50 }
 0x18e   : > { %1364 = vmatprep.subr.bf16.mxu0 %v824_v54  ;;  %1504 = vmatprep.subr.bf16.mxu1 %v824_v54 }
 0x195   : > { %1365 = vmatpush3.bf16.xpose.msra.mxu0 %v1966_v41  ;;  %1512 = vmatpush3.bf16.xpose.msra.mxu1 %v1966_v41  ;;  %v525_v41 = vpop.f32.mrf.mxu0 }
 0x196   : > { %1366 = vmatprep.subr.bf16.mxu0 %v823_v52  ;;  %1505 = vmatprep.subr.bf16.mxu1 %v823_v52 }
 0x197   : > { %v1443_v45 = vpop.f32.mrf.mxu0 }
 0x19d   : > { %1367 = vmatpush3.bf16.xpose.msra.mxu0 %v1968_v43  ;;  %1513 = vmatpush3.bf16.xpose.msra.mxu1 %v1968_v43  ;;  %v528_v43 = vpop.f32.mrf.mxu0 }
 0x19e   : > { %1368 = vmatprep.subr.bf16.mxu0 %v1987_v3  ;;  %1506 = vmatprep.subr.bf16.mxu1 %v1987_v3  ;;  %v807_v46 = vpack.c.bf16 %v528_v43, %v525_v41 }
 0x1a5   : > { %1369 = vmatpush3.bf16.xpose.msra.mxu0 %v1962_v35  ;;  %1514 = vmatpush3.bf16.xpose.msra.mxu1 %v1962_v35  ;;  %v1446_v35 = vpop.f32.mrf.mxu0 }
 0x1a6   : > { %1370 = vmatprep.subr.bf16.mxu0 %v1989_v6  ;;  %1507 = vmatprep.subr.bf16.mxu1 %v1989_v6 }
 0x1a7   : > { %v541_v48 = vpop.f32.mrf.mxu0 }
 0x1a9   : > { %v1447_v55 = vpop.f32.mrf.mxu0 }
 0x1aa   : > { %v810_v60 = vpack.c.bf16 %v1447_v55, %v1446_v35 }
 0x1ad   : > { %1371 = vmatpush3.bf16.xpose.msra.mxu0 %v1964_v37  ;;  %1515 = vmatpush3.bf16.xpose.msra.mxu1 %v1964_v37  ;;  %v808_v37 = vpack.c.bf16 %v1443_v45, %v1442_v44 }
 0x1b4   : > { %1373 = vmatmul.mubr.bf16.vlgmr.msra.gmra.mxu0 %v1980_v56  ;;  %1389 = vmatmul.mubr.bf16.vlgmr.msra.gmra.mxu1 %v805_v34  ;;  %v544_v56 = vpop.f32.mrf.mxu0 }
 0x1b5   : > { %1374 = vmatprep.mubr.bf16.mxu0 %v1978_v53  ;;  %1390 = vmatprep.mubr.bf16.mxu1 %v806_v31  ;;  %v809_v57 = vpack.c.bf16 %v544_v56, %v541_v48 }
 0x1b6   : > { %v1450_v58 = vpop.f32.mrf.mxu0 }
 0x1bc   : > { %1375 = vmatmul.mubr.bf16.gmra.mxu0 %v1978_v53  ;;  %1391 = vmatmul.mubr.bf16.gmra.mxu1 %v806_v31  ;;  %v557_v53 = vpop.f32.mrf.mxu0 }
 0x1bd   : > { %1376 = vmatprep.mubr.bf16.mxu0 %v1985_v2  ;;  %1392 = vmatprep.mubr.bf16.mxu1 %v807_v46 }
 0x1be   : > { %v1451_v59 = vpop.f32.mrf.mxu0 }
 0x1c0   : > { %v560_v61 = vpop.f32.mrf.mxu0 }
 0x1c1   : > { %v811_v62 = vpack.c.bf16 %v560_v61, %v557_v53 }
 0x1c4   : > { %1377 = vmatmul.mubr.bf16.gmra.mxu0 %v1985_v2  ;;  %1393 = vmatmul.mubr.bf16.gmra.mxu1 %v807_v46 }
 0x1c5   : > { %1378 = vmatprep.mubr.bf16.mxu0 %v1983_v63  ;;  %1394 = vmatprep.mubr.bf16.mxu1 %v808_v37 }
 0x1cc   : > { %1379 = vmatmul.mubr.bf16.gmra.mxu0 %v1983_v63  ;;  %1395 = vmatmul.mubr.bf16.gmra.mxu1 %v808_v37  ;;  %v812_v63 = vpack.c.bf16 %v1451_v59, %v1450_v58 }
 0x1cd   : > { %1380 = vmatprep.mubr.bf16.mxu0 %v1993_v14  ;;  %1396 = vmatprep.mubr.bf16.mxu1 %v809_v57 }
 0x1d4   : > { %1381 = vmatmul.mubr.bf16.gmra.mxu0 %v1993_v14  ;;  %1397 = vmatmul.mubr.bf16.gmra.mxu1 %v809_v57 }
 0x1d5   : > { %1382 = vmatprep.mubr.bf16.mxu0 %v1991_v11  ;;  %1398 = vmatprep.mubr.bf16.mxu1 %v810_v60 }
 0x1dc   : > { %1383 = vmatmul.mubr.bf16.gmra.mxu0 %v1991_v11  ;;  %1399 = vmatmul.mubr.bf16.gmra.mxu1 %v810_v60 }
 0x1dd   : > { %1384 = vmatprep.mubr.bf16.mxu0 %v1997_v24  ;;  %1400 = vmatprep.mubr.bf16.mxu1 %v811_v62 }
 0x1e4   : > { %1385 = vmatmul.mubr.bf16.gmra.mxu0 %v1997_v24  ;;  %1401 = vmatmul.mubr.bf16.gmra.mxu1 %v811_v62 }
 0x1e5   : > { %1386 = vmatprep.mubr.bf16.mxu0 %v1995_v21  ;;  %1402 = vmatprep.mubr.bf16.mxu1 %v812_v63 }
 0x1ec   : > { %1387 = vmatmul.mubr.bf16.gmra.mxu0 %v1995_v21  ;;  %1403 = vmatmul.mubr.bf16.gmra.mxu1 %v812_v63 }
 0x274   : > { %v863_v0 = vpop.f32.mrf.mxu0  ;;  %v943_v1 = vpop.f32.mrf.mxu1 }
 0x275   : > { %v1022_v2 = vmul.f32 0.088388346, %v863_v0  ;;  %v1054_v3 = vmul.f32 0.088388346, %v943_v1 }
 0x276   : > { %v865_v4 = vpop.f32.mrf.mxu0  ;;  %v945_v5 = vpop.f32.mrf.mxu1 }
 0x277   : > { %1086 = vst [vmem:[%s2031_s20] sm:$0xff] %v1022_v2  ;;  %1118 = vst [vmem:[%s2031_s20 + $0x100] sm:$0xff] %v1054_v3  ;;  %v1023_v6 = vmul.f32 0.088388346, %v865_v4  ;;  %v1055_v7 = vmul.f32 0.088388346, %v945_v5 }
 0x278   : > { %v867_v8 = vpop.f32.mrf.mxu0  ;;  %v947_v9 = vpop.f32.mrf.mxu1 }
 0x279   : > { %1087 = vst [vmem:[%s2031_s20 + $0x8] sm:$0xff] %v1023_v6  ;;  %1119 = vst [vmem:[%s2031_s20 + $0x108] sm:$0xff] %v1055_v7  ;;  %v1024_v10 = vmul.f32 0.088388346, %v867_v8  ;;  %v1056_v11 = vmul.f32 0.088388346, %v947_v9 }
 0x27a   : > { %v869_v12 = vpop.f32.mrf.mxu0  ;;  %v949_v13 = vpop.f32.mrf.mxu1 }
 0x27b   : > { %1088 = vst [vmem:[%s2031_s20 + $0x10] sm:$0xff] %v1024_v10  ;;  %1120 = vst [vmem:[%s2031_s20 + $0x110] sm:$0xff] %v1056_v11  ;;  %v1025_v14 = vmul.f32 0.088388346, %v869_v12  ;;  %v1057_v15 = vmul.f32 0.088388346, %v949_v13 }
 0x27c   : > { %v873_v16 = vpop.f32.mrf.mxu0  ;;  %v953_v17 = vpop.f32.mrf.mxu1 }
 0x27d   : > { %1089 = vst [vmem:[%s2031_s20 + $0x18] sm:$0xff] %v1025_v14  ;;  %1121 = vst [vmem:[%s2031_s20 + $0x118] sm:$0xff] %v1057_v15  ;;  %v1026_v18 = vmul.f32 0.088388346, %v873_v16  ;;  %v1058_v19 = vmul.f32 0.088388346, %v953_v17 }
 0x27e   : > { %v875_v20 = vpop.f32.mrf.mxu0  ;;  %v955_v21 = vpop.f32.mrf.mxu1 }
 0x27f   : > { %1090 = vst [vmem:[%s2031_s20 + $0x20] sm:$0xff] %v1026_v18  ;;  %1122 = vst [vmem:[%s2031_s20 + $0x120] sm:$0xff] %v1058_v19  ;;  %v1027_v22 = vmul.f32 0.088388346, %v875_v20  ;;  %v1059_v23 = vmul.f32 0.088388346, %v955_v21 }
 0x280   : > { %v877_v24 = vpop.f32.mrf.mxu0  ;;  %v957_v25 = vpop.f32.mrf.mxu1 }
 0x281   : > { %1091 = vst [vmem:[%s2031_s20 + $0x28] sm:$0xff] %v1027_v22  ;;  %1123 = vst [vmem:[%s2031_s20 + $0x128] sm:$0xff] %v1059_v23  ;;  %v1028_v26 = vmul.f32 0.088388346, %v877_v24  ;;  %v1060_v27 = vmul.f32 0.088388346, %v957_v25 }
 0x282   : > { %v879_v28 = vpop.f32.mrf.mxu0  ;;  %v959_v29 = vpop.f32.mrf.mxu1 }
 0x283   : > { %1092 = vst [vmem:[%s2031_s20 + $0x30] sm:$0xff] %v1028_v26  ;;  %1124 = vst [vmem:[%s2031_s20 + $0x130] sm:$0xff] %v1060_v27  ;;  %v1029_v30 = vmul.f32 0.088388346, %v879_v28  ;;  %v1061_v31 = vmul.f32 0.088388346, %v959_v29 }
 0x284   : > { %v883_v32 = vpop.f32.mrf.mxu0  ;;  %v963_v33 = vpop.f32.mrf.mxu1 }
 0x285   : > { %1093 = vst [vmem:[%s2031_s20 + $0x38] sm:$0xff] %v1029_v30  ;;  %1125 = vst [vmem:[%s2031_s20 + $0x138] sm:$0xff] %v1061_v31  ;;  %v1030_v34 = vmul.f32 0.088388346, %v883_v32  ;;  %v1062_v36 = vmul.f32 0.088388346, %v963_v33 }
 0x286   : > { %v885_v38 = vpop.f32.mrf.mxu0  ;;  %v965_v39 = vpop.f32.mrf.mxu1 }
 0x287   : > { %1094 = vst [vmem:[%s2031_s20 + $0x40] sm:$0xff] %v1030_v34  ;;  %1126 = vst [vmem:[%s2031_s20 + $0x140] sm:$0xff] %v1062_v36  ;;  %v1031_v40 = vmul.f32 0.088388346, %v885_v38  ;;  %v1063_v42 = vmul.f32 0.088388346, %v965_v39 }
 0x288   : > { %v887_v47 = vpop.f32.mrf.mxu0  ;;  %v967_v49 = vpop.f32.mrf.mxu1 }
 0x289   : > { %1095 = vst [vmem:[%s2031_s20 + $0x48] sm:$0xff] %v1031_v40  ;;  %1127 = vst [vmem:[%s2031_s20 + $0x148] sm:$0xff] %v1063_v42  ;;  %v1032_v51 = vmul.f32 0.088388346, %v887_v47  ;;  %v1064_v50 = vmul.f32 0.088388346, %v967_v49 }
 0x28a   : > { %v889_v54 = vpop.f32.mrf.mxu0  ;;  %v969_v52 = vpop.f32.mrf.mxu1 }
 0x28b   : > { %1096 = vst [vmem:[%s2031_s20 + $0x50] sm:$0xff] %v1032_v51  ;;  %1128 = vst [vmem:[%s2031_s20 + $0x150] sm:$0xff] %v1064_v50  ;;  %v1033_v44 = vmul.f32 0.088388346, %v889_v54  ;;  %v1065_v41 = vmul.f32 0.088388346, %v969_v52 }
 0x28c   : > { %v893_v45 = vpop.f32.mrf.mxu0  ;;  %v973_v43 = vpop.f32.mrf.mxu1 }
 0x28d   : > { %1097 = vst [vmem:[%s2031_s20 + $0x58] sm:$0xff] %v1033_v44  ;;  %1129 = vst [vmem:[%s2031_s20 + $0x158] sm:$0xff] %v1065_v41  ;;  %v1034_v46 = vmul.f32 0.088388346, %v893_v45  ;;  %v1066_v35 = vmul.f32 0.088388346, %v973_v43 }
 0x28e   : > { %v895_v48 = vpop.f32.mrf.mxu0  ;;  %v975_v55 = vpop.f32.mrf.mxu1 }
 0x28f   : > { %1098 = vst [vmem:[%s2031_s20 + $0x60] sm:$0xff] %v1034_v46  ;;  %1130 = vst [vmem:[%s2031_s20 + $0x160] sm:$0xff] %v1066_v35  ;;  %v1035_v37 = vmul.f32 0.088388346, %v895_v48  ;;  %v1067_v56 = vmul.f32 0.088388346, %v975_v55 }
 0x290   : > { %v897_v57 = vpop.f32.mrf.mxu0  ;;  %v977_v58 = vpop.f32.mrf.mxu1 }
 0x291   : > { %1099 = vst [vmem:[%s2031_s20 + $0x68] sm:$0xff] %v1035_v37  ;;  %1131 = vst [vmem:[%s2031_s20 + $0x168] sm:$0xff] %v1067_v56  ;;  %v1036_v53 = vmul.f32 0.088388346, %v897_v57  ;;  %v1068_v59 = vmul.f32 0.088388346, %v977_v58 }
 0x292   : > { %v899_v60 = vpop.f32.mrf.mxu0  ;;  %v979_v61 = vpop.f32.mrf.mxu1 }
 0x293   : > { %1100 = vst [vmem:[%s2031_s20 + $0x70] sm:$0xff] %v1036_v53  ;;  %1132 = vst [vmem:[%s2031_s20 + $0x170] sm:$0xff] %v1068_v59  ;;  %v1037_v62 = vmul.f32 0.088388346, %v899_v60  ;;  %v1069_v63 = vmul.f32 0.088388346, %v979_v61 }
 0x294   : > { %v903_v0 = vpop.f32.mrf.mxu0  ;;  %v983_v1 = vpop.f32.mrf.mxu1 }
 0x295   : > { %1101 = vst [vmem:[%s2031_s20 + $0x78] sm:$0xff] %v1037_v62  ;;  %1133 = vst [vmem:[%s2031_s20 + $0x178] sm:$0xff] %v1069_v63  ;;  %v1038_v2 = vmul.f32 0.088388346, %v903_v0  ;;  %v1070_v3 = vmul.f32 0.088388346, %v983_v1 }
 0x296   : > { %v905_v4 = vpop.f32.mrf.mxu0  ;;  %v985_v5 = vpop.f32.mrf.mxu1 }
 0x297   : > { %1102 = vst [vmem:[%s2031_s20 + $0x80] sm:$0xff] %v1038_v2  ;;  %1134 = vst [vmem:[%s2031_s20 + $0x180] sm:$0xff] %v1070_v3  ;;  %v1039_v6 = vmul.f32 0.088388346, %v905_v4  ;;  %v1071_v7 = vmul.f32 0.088388346, %v985_v5 }
 0x298   : > { %v907_v8 = vpop.f32.mrf.mxu0  ;;  %v987_v9 = vpop.f32.mrf.mxu1 }
 0x299   : > { %1103 = vst [vmem:[%s2031_s20 + $0x88] sm:$0xff] %v1039_v6  ;;  %1135 = vst [vmem:[%s2031_s20 + $0x188] sm:$0xff] %v1071_v7  ;;  %v1040_v10 = vmul.f32 0.088388346, %v907_v8  ;;  %v1072_v11 = vmul.f32 0.088388346, %v987_v9 }
 0x29a   : > { %v909_v12 = vpop.f32.mrf.mxu0  ;;  %v989_v13 = vpop.f32.mrf.mxu1 }
 0x29b   : > { %1104 = vst [vmem:[%s2031_s20 + $0x90] sm:$0xff] %v1040_v10  ;;  %1136 = vst [vmem:[%s2031_s20 + $0x190] sm:$0xff] %v1072_v11  ;;  %v1041_v14 = vmul.f32 0.088388346, %v909_v12  ;;  %v1073_v15 = vmul.f32 0.088388346, %v989_v13 }
 0x29c   : > { %v913_v16 = vpop.f32.mrf.mxu0  ;;  %v993_v17 = vpop.f32.mrf.mxu1 }
 0x29d   : > { %1105 = vst [vmem:[%s2031_s20 + $0x98] sm:$0xff] %v1041_v14  ;;  %1137 = vst [vmem:[%s2031_s20 + $0x198] sm:$0xff] %v1073_v15  ;;  %v1042_v18 = vmul.f32 0.088388346, %v913_v16  ;;  %v1074_v19 = vmul.f32 0.088388346, %v993_v17 }
 0x29e   : > { %v915_v20 = vpop.f32.mrf.mxu0  ;;  %v995_v21 = vpop.f32.mrf.mxu1 }
 0x29f   : > { %1106 = vst [vmem:[%s2031_s20 + $0xa0] sm:$0xff] %v1042_v18  ;;  %1138 = vst [vmem:[%s2031_s20 + $0x1a0] sm:$0xff] %v1074_v19  ;;  %v1043_v22 = vmul.f32 0.088388346, %v915_v20  ;;  %v1075_v23 = vmul.f32 0.088388346, %v995_v21 }
 0x2a0   : > { %v917_v24 = vpop.f32.mrf.mxu0  ;;  %v997_v25 = vpop.f32.mrf.mxu1 }
 0x2a1   : > { %1107 = vst [vmem:[%s2031_s20 + $0xa8] sm:$0xff] %v1043_v22  ;;  %1139 = vst [vmem:[%s2031_s20 + $0x1a8] sm:$0xff] %v1075_v23  ;;  %v1044_v26 = vmul.f32 0.088388346, %v917_v24  ;;  %v1076_v27 = vmul.f32 0.088388346, %v997_v25 }
 0x2a2   : > { %v919_v28 = vpop.f32.mrf.mxu0  ;;  %v999_v29 = vpop.f32.mrf.mxu1 }
 0x2a3   : > { %1108 = vst [vmem:[%s2031_s20 + $0xb0] sm:$0xff] %v1044_v26  ;;  %1140 = vst [vmem:[%s2031_s20 + $0x1b0] sm:$0xff] %v1076_v27  ;;  %v1045_v30 = vmul.f32 0.088388346, %v919_v28  ;;  %v1077_v31 = vmul.f32 0.088388346, %v999_v29 }
 0x2a4   : > { %v923_v32 = vpop.f32.mrf.mxu0  ;;  %v1003_v33 = vpop.f32.mrf.mxu1 }
 0x2a5   : > { %1109 = vst [vmem:[%s2031_s20 + $0xb8] sm:$0xff] %v1045_v30  ;;  %1141 = vst [vmem:[%s2031_s20 + $0x1b8] sm:$0xff] %v1077_v31  ;;  %v1046_v34 = vmul.f32 0.088388346, %v923_v32  ;;  %v1078_v36 = vmul.f32 0.088388346, %v1003_v33 }
 0x2a6   : > { %v925_v38 = vpop.f32.mrf.mxu0  ;;  %v1005_v39 = vpop.f32.mrf.mxu1 }
 0x2a7   : > { %1110 = vst [vmem:[%s2031_s20 + $0xc0] sm:$0xff] %v1046_v34  ;;  %1142 = vst [vmem:[%s2031_s20 + $0x1c0] sm:$0xff] %v1078_v36  ;;  %v1047_v40 = vmul.f32 0.088388346, %v925_v38  ;;  %v1079_v42 = vmul.f32 0.088388346, %v1005_v39 }
 0x2a8   : > { %v927_v47 = vpop.f32.mrf.mxu0  ;;  %v1007_v49 = vpop.f32.mrf.mxu1 }
 0x2a9   : > { %1111 = vst [vmem:[%s2031_s20 + $0xc8] sm:$0xff] %v1047_v40  ;;  %1143 = vst [vmem:[%s2031_s20 + $0x1c8] sm:$0xff] %v1079_v42  ;;  %v1048_v51 = vmul.f32 0.088388346, %v927_v47  ;;  %v1080_v50 = vmul.f32 0.088388346, %v1007_v49 }
 0x2aa   : > { %v929_v54 = vpop.f32.mrf.mxu0  ;;  %v1009_v52 = vpop.f32.mrf.mxu1 }
 0x2ab   : > { %1112 = vst [vmem:[%s2031_s20 + $0xd0] sm:$0xff] %v1048_v51  ;;  %1144 = vst [vmem:[%s2031_s20 + $0x1d0] sm:$0xff] %v1080_v50  ;;  %v1049_v44 = vmul.f32 0.088388346, %v929_v54  ;;  %v1081_v41 = vmul.f32 0.088388346, %v1009_v52 }
 0x2ac   : > { %v933_v45 = vpop.f32.mrf.mxu0  ;;  %v1013_v43 = vpop.f32.mrf.mxu1 }
 0x2ad   : > { %1113 = vst [vmem:[%s2031_s20 + $0xd8] sm:$0xff] %v1049_v44  ;;  %1145 = vst [vmem:[%s2031_s20 + $0x1d8] sm:$0xff] %v1081_v41  ;;  %v1050_v46 = vmul.f32 0.088388346, %v933_v45  ;;  %v1082_v35 = vmul.f32 0.088388346, %v1013_v43 }
 0x2ae   : > { %v935_v48 = vpop.f32.mrf.mxu0  ;;  %v1015_v55 = vpop.f32.mrf.mxu1 }
 0x2af   : > { %1114 = vst [vmem:[%s2031_s20 + $0xe0] sm:$0xff] %v1050_v46  ;;  %1146 = vst [vmem:[%s2031_s20 + $0x1e0] sm:$0xff] %v1082_v35  ;;  %v1051_v37 = vmul.f32 0.088388346, %v935_v48  ;;  %v1083_v56 = vmul.f32 0.088388346, %v1015_v55 }
 0x2b0   : > { %v937_v57 = vpop.f32.mrf.mxu0  ;;  %v1017_v58 = vpop.f32.mrf.mxu1 }
 0x2b1   : > { %1115 = vst [vmem:[%s2031_s20 + $0xe8] sm:$0xff] %v1051_v37  ;;  %1147 = vst [vmem:[%s2031_s20 + $0x1e8] sm:$0xff] %v1083_v56  ;;  %v1052_v53 = vmul.f32 0.088388346, %v937_v57  ;;  %v1084_v59 = vmul.f32 0.088388346, %v1017_v58 }
 0x2b2   : > { %v939_v60 = vpop.f32.mrf.mxu0  ;;  %v1019_v61 = vpop.f32.mrf.mxu1 }
 0x2b3   : > { %1116 = vst [vmem:[%s2031_s20 + $0xf0] sm:$0xff] %v1052_v53  ;;  %1148 = vst [vmem:[%s2031_s20 + $0x1f0] sm:$0xff] %v1084_v59  ;;  %v1053_v62 = vmul.f32 0.088388346, %v939_v60  ;;  %v1085_v63 = vmul.f32 0.088388346, %v1019_v61 }
 0x2b5   : > { %1117 = vst [vmem:[%s2031_s20 + $0xf8] sm:$0xff] %v1053_v62  ;;  %1149 = vst [vmem:[%s2031_s20 + $0x1f8] sm:$0xff] %v1085_v63 }
 0x2b6   : > { %1712 = shalt.err (!%p1709_p5)
}
 0x2b7   : > { %s1713_s23 = scalar_lea.hbm %s2098_s30, 8192  ;;  %s1717_s6 = scalar_lea.hbm %s2149_s3, 40960 }
 0x2b8   : > { %p1714_p10 = scmp.ne.s32.totalorder %s2098_s30, %s1713_s23  ;;  %p1718_p4 = scmp.lt.s32.totalorder %s2098_s30, %s2149_s3 }
 0x2b9   : > { %p1719_p6 = scmp.lt.s32.totalorder %s1717_s6, %s1713_s23 }
 0x2ba   : > { %p1715_p9 = pnand %p1714_p10, %p2164_p2 }
 0x2bb   : > { %p1720_p8 = por %p1719_p6, %p1718_p4 }
 0x2bc   : > { %p1716_p1 = pneg %p1715_p9 }
 0x2be   : > { %p1721_p3 = pnand %p1720_p8, %p1716_p1 }
 0x2c0   : > { %1724 = shalt.err (!%p1721_p3)
}
 0x2c1   : > { %s1775_s18 = smov 256   ;;  %s1776_s20 = smov 16  }
 0x2c2   : > { %1526 = dma.vmem_to_hbm [thread:$0]  (%p2164_p2), %s2100_s28, 8192, %s2098_s30, %s1151_s16, %s1775_s18, %s1775_s18, %s1776_s20  }
 0x2c3 PF: > { %p1548_p7 = scmp.ge.s32.totalorder %s1767_s15, 2  ;;  %s1179_s27 = sand.u32 1, %s1755_s12  }
 0x2c4   : > { %p2165_p11 = scmp.ne.s32.totalorder %s2155_s19, 0  ;;  %s1180_s25 = scalar_lea.sflag [#allocation4], %s1179_s27 }
 0x2c6   : > { %p1540_p12 = pnand %p1548_p7, %p2165_p11 }
 0x2c8   : > { %p1541_p13 = pneg %p1540_p12 }
 0x2ca   : > { %1750 = dma.done.wait (%p1541_p13), %s1180_s25, 8192  }
 0x2cb   : > { %1752 = vsyncadd (%p1541_p13), %s1180_s25, 4294959104  ;;  %p17_p0 = scmp.ge.s32.totalorder %s1874_s7, 7   ;;  %s2166_s12 = smov %s1759_s13 }
 0x2cc   : > { %s2167_s13 = smov %s1763_s14  ;;  %s2168_s14 = smov %s1890_s11 }
 0x2cd   : > { %s2169_s15 = smov %s1874_s7  ;;  %19 = sbr.rel (!%p17_p0) target bundleno = 6 (0x6), region = 85 }
 0x2d2   :  { %1185 = vsyncpa [#allocation3], 1 }
 0x2d3   :  { %1187 = vsyncpa [#allocation3 + $0x1], 1 }
 0x2d4   :  { %1188 = vsyncpa [#allocation6], 1 }
 0x2d5   :  { %1189 = vsyncpa [#allocation4], 1 }
 0x2d6   :  { %1191 = vsyncpa [#allocation4 + $0x1], 1 }

</bundles_post_ra>
